<compile_context>
chip_gen: v6e
topology: v6e:2x2x1
jax: 0.10.0
libtpu: 0.0.40
codegen_flags: <defaults>
</compile_context>

<pallas_src>
import functools

import jax
import jax.numpy as jnp
from jax import lax
from jax.experimental import pallas as pl
from jax.experimental.pallas import tpu as pltpu


def _round_up(x, m):
    return ((x + m - 1) // m) * m


def _infonce_kernel(sk_ref, im_ref, imsq_ref, out_ref, *,
                    inv_temp, euclidean, valid_b, row_tile):
    """One row-tile of sk against the full (resident) im.

    sk_ref  : [TB, D]  row tile of the (padded) sketch features
    im_ref  : [Bp, D]  all (padded) image features, resident across the grid
    imsq_ref: [1,  Bp] precomputed ||im_m||^2 (only read when euclidean)
    out_ref : [TB, 1]  per-row loss:  logsumexp_m(logits[b, m]) - logits[b, b]
    """
    i = pl.program_id(0)

    sk = sk_ref[...].astype(jnp.float32)                 # [TB, D]
    im = im_ref[...].astype(jnp.float32)                 # [Bp, D]
    tb = sk.shape[0]
    bp = im.shape[0]

    # Rows of `im` that pair with this sk row-tile (the "diagonal" block).
    row0 = pl.multiple_of(i * row_tile, row_tile)
    im_d = im_ref[pl.ds(row0, row_tile), :].astype(jnp.float32)   # [TB, D]

    # Cross term on the MXU:  sk @ im^T  -> [TB, Bp]
    cross = lax.dot_general(sk, im, (((1,), (1,)), ((), ())),
                            preferred_element_type=jnp.float32)

    if euclidean:
        # Gram expansion: d^2[b,m] = ||sk_b||^2 + ||im_m||^2 - 2 * sk_b . im_m
        sk_sq = jnp.sum(sk * sk, axis=1, keepdims=True)            # [TB, 1]
        d2 = jnp.maximum(sk_sq + imsq_ref[...] - 2.0 * cross, 0.0)  # clamp: fp cancellation
        logits = -jnp.sqrt(d2) * inv_temp                           # [TB, Bp]
        # Positive column (diagonal) computed directly, O(TB*D):
        diff = sk - im_d
        pos = -jnp.sqrt(jnp.sum(diff * diff, axis=1, keepdims=True)) * inv_temp
    else:
        # dist_type == 1 (raw dot) and dist_type >= 2 (wrapper pre-normalizes):
        # logits = (sk @ im^T) / T  — matches -(-features @ features.T)/T.
        logits = cross * inv_temp
        pos = jnp.sum(sk * im_d, axis=1, keepdims=True) * inv_temp

    # Mask padded im columns out of the logsumexp.
    if bp != valid_b:
        col = lax.broadcasted_iota(jnp.int32, (tb, bp), 1)
        logits = jnp.where(col < valid_b, logits, jnp.float32(-1e30))

    row_max = jnp.max(logits, axis=1, keepdims=True)                # [TB, 1]
    lse = row_max + jnp.log(jnp.sum(jnp.exp(logits - row_max),
                                    axis=1, keepdims=True))          # [TB, 1]
    per_row = lse - pos                                              # [TB, 1]

    # Zero padded sk rows so the wrapper can just sum the output.
    if bp != valid_b:
        row = lax.broadcasted_iota(jnp.int32, (tb, 1), 0) + i * row_tile
        per_row = jnp.where(row < valid_b, per_row, 0.0)

    out_ref[...] = per_row


def single_anchor_infonce(sk, im, temperature=1.0, dist_type=0, block_rows=256):
    """sk, im: [batch, dims].  Returns the scalar InfoNCE loss (PyTorch-equivalent)."""
    assert sk.ndim == 2 and sk.shape == im.shape
    b, d = sk.shape
    sk = sk.astype(jnp.float32)
    im = im.astype(jnp.float32)

    if int(dist_type) not in (0, 1):
        # F.normalize(x, dim=1, eps=1e-12), done once here instead of per tile.
        sk = sk / jnp.maximum(jnp.sqrt(jnp.sum(sk * sk, axis=1, keepdims=True)), 1e-12)
        im = im / jnp.maximum(jnp.sqrt(jnp.sum(im * im, axis=1, keepdims=True)), 1e-12)

    # Row tile: multiple of 8 sublanes; batch padded to a multiple of the tile.
    tb = min(int(block_rows), _round_up(b, 8))
    tb = max(8, _round_up(tb, 8))
    bp = _round_up(b, tb)
    if bp != b:
        sk = jnp.pad(sk, ((0, bp - b), (0, 0)))
        im = jnp.pad(im, ((0, bp - b), (0, 0)))

    # ||im_m||^2 as a lane-dense [1, Bp] row, resident across the grid
    # (avoids recomputing the O(B*D) reduce on every row tile).
    im_sq = jnp.sum(im * im, axis=1)[None, :]

    kernel = functools.partial(
        _infonce_kernel,
        inv_temp=1.0 / float(temperature),
        euclidean=(int(dist_type) == 0),
        valid_b=b,
        row_tile=tb,
    )

    n_tiles = bp // tb
    per_row = pl.pallas_call(
        kernel,
        grid=(n_tiles,),
        in_specs=[
            pl.BlockSpec((tb, d), lambda i: (i, 0)),     # sk: streamed row tiles
            pl.BlockSpec((bp, d), lambda i: (0, 0)),     # im: resident
            pl.BlockSpec((1, bp), lambda i: (0, 0)),     # ||im||^2: resident
        ],
        out_specs=pl.BlockSpec((tb, 1), lambda i: (i, 0)),
        out_shape=jax.ShapeDtypeStruct((bp, 1), jnp.float32),
        compiler_params=pltpu.CompilerParams(
            dimension_semantics=("parallel",),           # megacore-shard row tiles on v7x
            vmem_limit_bytes=48 * 1024 * 1024,           # headroom under v7x's 64 MiB VMEM
        ),
    )(sk, im, im_sq)

    return jnp.sum(per_row) / b


if __name__ == "__main__":
    key = jax.random.PRNGKey(0)

    def reference(sk, im, temperature, dist_type):
        sk = jnp.asarray(sk, jnp.float32)
        im = jnp.asarray(im, jnp.float32)
        if dist_type == 0:
            diff = sk[:, None, :] - im[None, :, :]
            dist = jnp.sqrt(jnp.sum(diff * diff, axis=2))
        elif dist_type == 1:
            dist = -sk @ im.T
        else:
            skn = sk / jnp.maximum(jnp.linalg.norm(sk, axis=1, keepdims=True), 1e-12)
            imn = im / jnp.maximum(jnp.linalg.norm(im, axis=1, keepdims=True), 1e-12)
            dist = -skn @ imn.T
        logits = -dist / temperature
        return jnp.mean(jax.nn.logsumexp(logits, axis=1) - jnp.diagonal(logits))

    cases = [
        dict(b=8, d=32, temperature=1.0, dist_type=0),   # module defaults
        dict(b=6, d=32, temperature=0.5, dist_type=0),   # exercises row/column padding
        dict(b=8, d=32, temperature=1.0, dist_type=2),   # cosine (normalize) branch
    ]
    for c in cases:
        ka, kb = jax.random.split(jax.random.fold_in(key, 131 * c["b"] + c["dist_type"]))
        sk = jax.random.normal(ka, (c["b"], c["d"]), dtype=jnp.float32)
        im = jax.random.normal(kb, (c["b"], c["d"]), dtype=jnp.float32)

        loss = single_anchor_infonce(sk, im, temperature=c["temperature"],
                                     dist_type=c["dist_type"])
        loss = jax.block_until_ready(loss)

        ref = reference(sk, im, c["temperature"], c["dist_type"])
        assert jnp.allclose(loss, ref, rtol=1e-4, atol=1e-4), (c, float(loss), float(ref))

    print("KERNEL_OK")
</pallas_src>

<mosaic_0001>
module attributes {stable_mosaic.version = 11 : i64} {
  func.func @_infonce_kernel(%arg0: i32, %arg1: memref<8x32xf32, #tpu.memory_space<vmem>>, %arg2: memref<8x32xf32, #tpu.memory_space<vmem>>, %arg3: memref<1x8xf32, #tpu.memory_space<vmem>>, %arg4: memref<8x1xf32, #tpu.memory_space<vmem>>) attributes {dimension_semantics = [#tpu.dimension_semantics<parallel>], iteration_bounds = array<i64: 1>, scalar_prefetch = 0 : i64, scratch_operands = 0 : i64, tpu.core_type = #tpu.core_type<tc>, window_params = [{transform_indices = @transform_0, window_bounds = array<i64: 8, 32>}, {pipeline_mode = #tpu.pipeline_mode<synchronous>, transform_indices = @transform_1, window_bounds = array<i64: 8, 32>}, {pipeline_mode = #tpu.pipeline_mode<synchronous>, transform_indices = @transform_2, window_bounds = array<i64: 1, 8>}, {transform_indices = @transform_3, window_bounds = array<i64: 8, 1>}]} {
    %c0 = arith.constant 0 : index
    %c0_0 = arith.constant 0 : index
    %0 = vector.load %arg1[%c0, %c0_0] : memref<8x32xf32, #tpu.memory_space<vmem>>, vector<8x32xf32>
    %c0_1 = arith.constant 0 : index
    %c0_2 = arith.constant 0 : index
    %1 = vector.load %arg2[%c0_1, %c0_2] : memref<8x32xf32, #tpu.memory_space<vmem>>, vector<8x32xf32>
    %c8_i32 = arith.constant 8 : i32
    %2 = arith.muli %arg0, %c8_i32 : i32
    %3 = tpu.assume_multiple %2, 8 : i32
    %4 = arith.index_cast %3 : i32 to index
    %c0_3 = arith.constant 0 : index
    %5 = vector.load %arg2[%4, %c0_3] : memref<8x32xf32, #tpu.memory_space<vmem>>, vector<8x32xf32>
    %cst = arith.constant dense<0.000000e+00> : vector<8x8xf32>
    %6 = tpu.matmul %0, %1, %cst {dimension_numbers = #tpu.dot_dimension_numbers<[1], [1], [0], [0], [0, 0, 1, 0], [], []>} : vector<8x32xf32>, vector<8x32xf32>, vector<8x8xf32> -> vector<8x8xf32>
    %7 = arith.mulf %0, %0 : vector<8x32xf32>
    %cst_4 = arith.constant dense<0.000000e+00> : vector<8xf32>
    %8 = vector.multi_reduction <add>, %7, %cst_4 [1] : vector<8x32xf32> to vector<8xf32>
    %9 = vector.shape_cast %8 : vector<8xf32> to vector<8x1xf32>
    %c0_5 = arith.constant 0 : index
    %c0_6 = arith.constant 0 : index
    %10 = vector.load %arg3[%c0_5, %c0_6] : memref<1x8xf32, #tpu.memory_space<vmem>>, vector<1x8xf32>
    %11 = vector.broadcast %9 : vector<8x1xf32> to vector<8x8xf32>
    %12 = vector.broadcast %10 : vector<1x8xf32> to vector<8x8xf32>
    %13 = arith.addf %11, %12 : vector<8x8xf32>
    %cst_7 = arith.constant 2.000000e+00 : f32
    %14 = vector.broadcast %cst_7 : f32 to vector<8x8xf32>
    %15 = arith.mulf %14, %6 : vector<8x8xf32>
    %16 = arith.subf %13, %15 : vector<8x8xf32>
    %cst_8 = arith.constant 0.000000e+00 : f32
    %17 = vector.broadcast %cst_8 : f32 to vector<8x8xf32>
    %18 = arith.maximumf %16, %17 : vector<8x8xf32>
    %19 = math.sqrt %18 : vector<8x8xf32>
    %cst_9 = arith.constant 0.000000e+00 : f32
    %20 = vector.broadcast %cst_9 : f32 to vector<8x8xf32>
    %21 = arith.subf %20, %19 : vector<8x8xf32>
    %cst_10 = arith.constant 1.000000e+00 : f32
    %22 = vector.broadcast %cst_10 : f32 to vector<8x8xf32>
    %23 = arith.mulf %21, %22 : vector<8x8xf32>
    %24 = arith.subf %0, %5 : vector<8x32xf32>
    %25 = arith.mulf %24, %24 : vector<8x32xf32>
    %cst_11 = arith.constant dense<0.000000e+00> : vector<8xf32>
    %26 = vector.multi_reduction <add>, %25, %cst_11 [1] : vector<8x32xf32> to vector<8xf32>
    %27 = vector.shape_cast %26 : vector<8xf32> to vector<8x1xf32>
    %28 = math.sqrt %27 : vector<8x1xf32>
    %cst_12 = arith.constant 0.000000e+00 : f32
    %29 = vector.broadcast %cst_12 : f32 to vector<8x1xf32>
    %30 = arith.subf %29, %28 : vector<8x1xf32>
    %cst_13 = arith.constant 1.000000e+00 : f32
    %31 = vector.broadcast %cst_13 : f32 to vector<8x1xf32>
    %32 = arith.mulf %30, %31 : vector<8x1xf32>
    %cst_14 = arith.constant dense<0xFF800000> : vector<8xf32>
    %33 = vector.multi_reduction <maximumf>, %23, %cst_14 [1] : vector<8x8xf32> to vector<8xf32>
    %34 = vector.shape_cast %33 : vector<8xf32> to vector<8x1xf32>
    %35 = vector.broadcast %34 : vector<8x1xf32> to vector<8x8xf32>
    %36 = arith.subf %23, %35 : vector<8x8xf32>
    %37 = math.exp %36 : vector<8x8xf32>
    %cst_15 = arith.constant dense<0.000000e+00> : vector<8xf32>
    %38 = vector.multi_reduction <add>, %37, %cst_15 [1] : vector<8x8xf32> to vector<8xf32>
    %39 = vector.shape_cast %38 : vector<8xf32> to vector<8x1xf32>
    %40 = math.log %39 : vector<8x1xf32>
    %41 = arith.addf %34, %40 : vector<8x1xf32>
    %42 = arith.subf %41, %32 : vector<8x1xf32>
    %c0_16 = arith.constant 0 : index
    %c0_17 = arith.constant 0 : index
    %43 = vector.load %arg4[%c0_16, %c0_17] : memref<8x1xf32, #tpu.memory_space<vmem>>, vector<8x1xf32>
    tpu.vector_store %arg4[%c0_16, %c0_17], %42 {strides = array<i32>} : memref<8x1xf32, #tpu.memory_space<vmem>>, vector<8x1xf32>,
    return
  }
  func.func @transform_0(%arg0: i32) -> (i32, i32) {
    %c0_i32 = arith.constant 0 : i32
    %c0_i32_0 = arith.constant 0 : i32
    return %arg0, %c0_i32 : i32, i32
  }
  func.func @transform_1(%arg0: i32) -> (i32, i32) {
    %c0_i32 = arith.constant 0 : i32
    %c0_i32_0 = arith.constant 0 : i32
    %c0_i32_1 = arith.constant 0 : i32
    return %c0_i32, %c0_i32_0 : i32, i32
  }
  func.func @transform_2(%arg0: i32) -> (i32, i32) {
    %c0_i32 = arith.constant 0 : i32
    %c0_i32_0 = arith.constant 0 : i32
    %c0_i32_1 = arith.constant 0 : i32
    return %c0_i32, %c0_i32_0 : i32, i32
  }
  func.func @transform_3(%arg0: i32) -> (i32, i32) {
    %c0_i32 = arith.constant 0 : i32
    %c0_i32_0 = arith.constant 0 : i32
    return %arg0, %c0_i32 : i32, i32
  }
}

</mosaic_0001>

<bundles_post_ra>
// kernel: tpu_custom_call.1
= control target key start
LH: loop header
LB: loop body
LE: loop exit
PB: predicated region body
PF: predicated region fallthrough
CT: control target
= control target key end

     0   :  { %8 = vsyncpa [#allocation3], 0  ;;  %s280_s0 = inlined_call_operand.hbm [shape: f32[8,32], index: 0, kind: input, shape index: {}]   ;;  %s281_s1 = inlined_call_operand.hbm [shape: f32[8,32], index: 1, kind: input, shape index: {}]   ;;  %s282_s2 = inlined_call_operand.vmem [shape: f32[1,8], index: 2, kind: input, shape index: {}]   ;;  %s283_s3 = inlined_call_operand.vmem [shape: f32[8,1], index: 3, kind: output, shape index: {}]  }
   0x1   :  { %9 = vsyncpa [#allocation5], 0  ;;  %s244_s12 = smov [#allocation2]   ;;  %s245_s14 = smov [#allocation4]  }
   0x2   :  { %s16_s13 = sshll.u32 %s244_s12, 4  ;;  %s26_s15 = sshll.u32 %s245_s14, 4  ;;  %s17_s13 = int_to_ptr.vmem [resolvable:$true] %s16_s13  ;;  %s27_s15 = int_to_ptr.vmem [resolvable:$true] %s26_s15 }
   0x3   :  { %s208_s16 = scalar_lea.vmem %s17_s13, 128  ;;  %p213_p1 = scmp.lt.s32.totalorder %s17_s13, %s17_s13 }
   0x4   :  { %p209_p0 = scmp.ne.s32.totalorder %s17_s13, %s208_s16  ;;  %p214_p2 = scmp.lt.s32.totalorder %s208_s16, %s208_s16 }
   0x6   :  { %p215_p3 = por %p214_p2, %p213_p1 }
   0x8   :  { %p216_p4 = pnand %p215_p3, %p209_p0 }
   0xa   :  { %219 = shalt.err (!%p216_p4)
}
   0xb   :  { %19 = dma.hbm_to_vmem [thread:$0]  %s280_s0, 128, %s17_s13, [#allocation3]  }
   0xc   :  { %s228_s19 = scalar_lea.vmem %s27_s15, 128  ;;  %p233_p6 = scmp.lt.s32.totalorder %s27_s15, %s27_s15 }
   0xd   :  { %p229_p5 = scmp.ne.s32.totalorder %s27_s15, %s228_s19  ;;  %p234_p7 = scmp.lt.s32.totalorder %s228_s19, %s228_s19 }
   0xf   :  { %p235_p8 = por %p234_p7, %p233_p6 }
  0x11   :  { %p236_p9 = pnand %p235_p8, %p229_p5 }
  0x13   :  { %239 = shalt.err (!%p236_p9)
}
  0x14   :  { %29 = dma.hbm_to_vmem [thread:$0]  %s281_s1, 128, %s27_s15, [#allocation5]  }
  0x15   :  { %240 = dma.done.wait [#allocation3], 128  }
  0x16   :  { %241 = vsyncadd [#allocation3], 4294967168 }
  0x17   :  { %242 = dma.done.wait [#allocation5], 128  }
  0x18   :  { %243 = vsyncadd [#allocation5], 4294967168  ;;  %v246_v0 = vmov 0.0   ;;  %vm247_vm0 = vmmov 0   ;;  %vm43_vm1 = vcmask 261120   ;;  %v39_v1 = vld [vmem:[#allocation4] sm:$0xff] }
  0x19   :  { %183 = vmatprep.subr.mxu0 %v246_v0  ;;  %185 = vmatprep.mubr.msk.f32.mxu0 %vm247_vm0, %v246_v0  ;;  %v38_v2 = vld [vmem:[#allocation2] sm:$0xff]  ;;  %vm156_vm4 = vcmask 64512   ;;  %vm170_vm7 = vcmask 7168  }
  0x1a   :  { %184 = vmatpush3.xpose.msk.msra.mxu0 %vm43_vm1, %v39_v1  ;;  %v120_v3 = vmul.f32 %v38_v2, %v38_v2  ;;  %v143_v5 = vsub.f32 %v38_v2, %v39_v1  ;;  %v180_v8 = vld [vmem:[%s282_s2] ss:$0 sm:$0xff] }
  0x1c   :  { %v121_v4 = vsel %vm43_vm1, %v120_v3, 0.0  ;;  %v144_v6 = vmul.f32 %v143_v5, %v143_v5 }
  0x1d   :  { %186 = vmatmul.mubr.msk.f32.vlgmr.msra.gmra.mxu0 %vm43_vm1, %v38_v2  ;;  %122 = vadd.xlane.f32.xlu0 %v121_v4 }
  0x1e   :  { %v145_v7 = vsel %vm43_vm1, %v144_v6, 0.0 }
  0x1f   :  { %146 = vadd.xlane.f32.xlu1 %v145_v7 }
  0xa6   :  { %v123_v9 = vpop.xlane.xlu0 %122 }
  0xa7   :  { %v131_v10 = vadd.f32 %v180_v8, %v123_v9 }
  0xa8   :  { %v147_v28 = vpop.xlane.xlu1 %146 }
  0xa9   :  { %vm150_vm5 = vcmp.eq.f32.partialorder %v147_v28, inf  ;;  %v153_v32 = vand.u32 2147483648, %v147_v28  ;;  %vm152_vm6 = vcmp.eq.f32.partialorder %v147_v28, 0.0 }
  0xdd   :  { %v116_v11 = vpop.f32.mrf.mxu0 }
  0xde   :  { %v132_v12 = vmul.f32 2.0, %v116_v11 }
  0xdf   :  { %v187_v13 = vpop.f32.mrf.mxu0 }
  0xe0   :  { %v133_v14 = vsub.f32 %v131_v10, %v132_v12 }
  0xe2   :  { %v134_v15 = vmax.f32 %v133_v14, 0.0 }
  0xe4   :  { %192 = vrsqrt.f32 %v134_v15  ;;  %vm137_vm2 = vcmp.eq.f32.partialorder %v134_v15, inf  ;;  %v140_v18 = vand.u32 2147483648, %v134_v15  ;;  %vm139_vm3 = vcmp.eq.f32.partialorder %v134_v15, 0.0 }
  0xf1   :  { %v193_v16 = vpop.eup %192 }
  0xf2   :  { %v136_v17 = vmul.f32 %v193_v16, %v134_v15 }
  0xf4   :  { %v138_v19 = vsel %vm137_vm2, %v134_v15, %v136_v17 }
  0xf5   :  { %v141_v20 = vsel %vm139_vm3, %v140_v18, %v138_v19 }
  0xf6   :  { %v142_v21 = vsub.f32 0.0, %v141_v20 }
  0xf8   :  { %v157_v22 = vsel %vm156_vm4, %v142_v21, -inf }
  0xf9   :  { %158 = vmax.xlane.f32.xlu0 %v157_v22 }
 0x182   :  { %v159_v23 = vpop.xlane.xlu0 %158 }
 0x183   :  { %v160_v24 = vsub.f32 %v142_v21, %v159_v23 }
 0x185   :  { %v161_v25 = vmul.f32 1.442695, %v160_v24 }
 0x187   :  { %194 = vpow2.f32 %v161_v25 }
 0x188   :  { %196 = vrsqrt.f32 %v147_v28 }
 0x194   :  { %v195_v26 = vpop.eup %194 }
 0x195   :  { %v163_v27 = vsel %vm156_vm4, %v195_v26, 0.0  ;;  %v197_v30 = vpop.eup %196 }
 0x196   :  { %164 = vadd.xlane.f32.xlu1 %v163_v27  ;;  %v149_v31 = vmul.f32 %v197_v30, %v147_v28 }
 0x198   :  { %v151_v33 = vsel %vm150_vm5, %v147_v28, %v149_v31 }
 0x199   :  { %v154_v35 = vsel %vm152_vm6, %v153_v32, %v151_v33 }
 0x19a   :  { %v155_v37 = vsub.f32 0.0, %v154_v35 }
 0x21f   :  { %v165_v29 = vpop.xlane.xlu1 %164 }
 0x220   :  { %198 = vlog2.f32 %v165_v29 }
 0x22d   :  { %v199_v34 = vpop.eup %198 }
 0x22e   :  { %v167_v36 = vmul.f32 0.6931472, %v199_v34 }
 0x230   :  { %v168_v38 = vadd.f32 %v167_v36, %v159_v23 }
 0x232   :  { %v169_v39 = vsub.f32 %v168_v38, %v155_v37 }
 0x234   :  { %171 = vst.msk [vmem:[%s283_s3] sm:$0xff] %vm170_vm7, %v169_v39 }
 0x235   :  { %176 = vsyncpa [#allocation3], 1 }
 0x236   :  { %177 = vsyncpa [#allocation5], 1 }

</bundles_post_ra>
